<compile_context>
chip_gen: v7x
topology: tpu7x:2x2x1
jax: 0.10.0
libtpu: 0.0.40
codegen_flags: <defaults>
</compile_context>

<pallas_src>
import functools

import jax
import jax.numpy as jnp
from jax import lax
from jax.experimental import pallas as pl
from jax.experimental.pallas import tpu as pltpu

# Sobel kernels (same values as the PyTorch module's fixed Parameters).
_KX = ((-1.0, 0.0, 1.0),
       (-2.0, 0.0, 2.0),
       (-1.0, 0.0, 1.0))
_KY = (( 1.0,  2.0,  1.0),
       ( 0.0,  0.0,  0.0),
       (-1.0, -2.0, -1.0))


def _edge_loss_kernel(vis_ref, gen_ref, out_ref, *, w, compute_dtype):
    """vis_ref / gen_ref: (TB, H*W) block, images flattened onto the lane axis.

    out_ref: (1, 1) f32 SMEM -> this batch block's sum(|grad_gen - grad_vis|).
    """
    tb, L = vis_ref.shape                       # L == H*W

    # Border masks (computed once per block, shared by both images).
    idx = lax.broadcasted_iota(jnp.int32, (tb, L), 1)
    col = idx % w
    keep_left = col != 0                        # a left neighbour exists
    keep_right = col != (w - 1)                 # a right neighbour exists
    keep_up = idx >= w                          # a row above exists
    keep_down = idx < (L - w)                   # a row below exists

    def sobel_mag(x_raw):
        x = x_raw.astype(compute_dtype)
        # Horizontal neighbours via lane rotation; zero where conv pads.
        left = jnp.where(keep_left, pltpu.roll(x, 1 % L, axis=1), 0.0)
        right = jnp.where(keep_right, pltpu.roll(x, (L - 1) % L, axis=1), 0.0)
        hd = right - left                       # horizontal [-1, 0, 1]
        hs = left + 2.0 * x + right             # horizontal [ 1, 2, 1]
        # Vertical neighbours = lane rotation by +/-W within the flat image.
        hd_up = jnp.where(keep_up, pltpu.roll(hd, w % L, axis=1), 0.0)
        hd_down = jnp.where(keep_down, pltpu.roll(hd, (L - w) % L, axis=1), 0.0)
        gx = hd_up + 2.0 * hd + hd_down         # vertical [1, 2, 1]
        hs_up = jnp.where(keep_up, pltpu.roll(hs, w % L, axis=1), 0.0)
        hs_down = jnp.where(keep_down, pltpu.roll(hs, (L - w) % L, axis=1), 0.0)
        gy = hs_up - hs_down                    # vertical [1, 0, -1]
        return jnp.abs(gx) + jnp.abs(gy)

    # |diff| accumulation / reduction always in f32.
    g_vis = sobel_mag(vis_ref[...]).astype(jnp.float32)
    g_gen = sobel_mag(gen_ref[...]).astype(jnp.float32)
    out_ref[0, 0] = jnp.sum(jnp.abs(g_gen - g_vis))


def _vmem_capacity_bytes():
    try:
        return int(pltpu.get_tpu_info().vmem_capacity_bytes)
    except Exception:
        return 64 * 1024 * 1024        # conservative: v7x per-TensorCore VMEM


def _has_bf16_vpu():
    """bf16 VPU exists on v6e / v7x; v5e and older emulate it -> use f32 there."""
    try:
        kind = jax.devices()[0].device_kind.lower()
    except Exception:
        return True
    for tag in ("v2", "v3", "v4", "v5"):
        if tag in kind:
            return False
    return True


def _pick_batch_block(b, per_img_in, per_img_f32, cap_use):
    """Batch-block size: ~4 MiB of input per block (in the storage dtype),
    bounded by VMEM (double-buffered inputs + f32 working set), a divisor of
    B, and a multiple of 8 (or the full batch) for sublane tiling."""
    target_imgs = max(1, (4 << 20) // max(per_img_in, 1))
    per_img_vmem = 4 * per_img_in + 10 * per_img_f32   # 2 in x 2 bufs + f32 temps
    fit_imgs = max(1, (cap_use - (3 << 20)) // max(per_img_vmem, 1))
    want = max(1, min(b, target_imgs, fit_imgs))
    cands = [d for d in range(8, b + 1, 8) if b % d == 0] + [b]
    le = [d for d in cands if d <= want]
    return max(le) if le else min(cands)


@jax.jit
def edge_loss(image_vis, generate_img):
    """image_vis, generate_img: (B, 1, H, W). Returns scalar f32
    (= F.l1_loss of the two Sobel gradient magnitudes, reduction='mean')."""
    assert image_vis.shape == generate_img.shape
    b, c, h, w = image_vis.shape
    assert c == 1, "Sobelxy weights are (1,1,3,3) -> single-channel input"
    assert h >= 1 and w >= 1

    # Channel squeeze + flatten each image onto the lane axis.  Both are
    # contiguous reshapes -> free (no HBM copy); dtype stays as stored.
    hw = h * w
    vis = image_vis.reshape(b, hw)
    gen = generate_img.reshape(b, hw)

    # Generation-aware sizing.
    cap_use = (_vmem_capacity_bytes() * 3) // 4       # leave headroom
    itemsize = jnp.dtype(image_vis.dtype).itemsize
    per_img_in = hw * itemsize
    per_img_f32 = hw * 4
    tb = _pick_batch_block(b, per_img_in, per_img_f32, cap_use)
    nb = b // tb

    est = tb * (4 * per_img_in + 10 * per_img_f32) + (3 << 20)
    vmem_limit = int(min(cap_use, max(32 << 20, est)))

    # bf16 compute fast path only where the VPU supports it natively.
    if image_vis.dtype == jnp.bfloat16 and _has_bf16_vpu():
        compute_dtype = jnp.bfloat16
    else:
        compute_dtype = jnp.float32

    kernel = functools.partial(_edge_loss_kernel, w=w, compute_dtype=compute_dtype)

    partials = pl.pallas_call(
        kernel,
        out_shape=jax.ShapeDtypeStruct((nb, 1), jnp.float32),
        grid_spec=pltpu.PrefetchScalarGridSpec(
            num_scalar_prefetch=0,
            grid=(nb,),
            in_specs=[
                pl.BlockSpec((tb, hw), lambda i: (i, 0)),
                pl.BlockSpec((tb, hw), lambda i: (i, 0)),
            ],
            out_specs=pl.BlockSpec(
                (1, 1), lambda i: (i, 0), memory_space=pltpu.SMEM
            ),
        ),
        compiler_params=pltpu.CompilerParams(
            dimension_semantics=("parallel",),
            vmem_limit_bytes=vmem_limit,
        ),
    )(vis, gen)

    # F.l1_loss default reduction='mean' over all B*1*H*W elements.
    return jnp.sum(partials) / jnp.float32(b * c * h * w)


def _edge_loss_ref(image_vis, generate_img):
    """Pure-JAX reference (direct 3x3 cross-correlation) for verification."""
    def sobel(x):  # x: (B,1,H,W)
        xp = jnp.pad(x[:, 0].astype(jnp.float32), ((0, 0), (1, 1), (1, 1)))
        bb, hp, wp = xp.shape
        hh, ww = hp - 2, wp - 2
        gx = jnp.zeros((bb, hh, ww), jnp.float32)
        gy = jnp.zeros((bb, hh, ww), jnp.float32)
        for dy in range(3):
            for dx in range(3):
                patch = xp[:, dy:dy + hh, dx:dx + ww]
                gx = gx + _KX[dy][dx] * patch
                gy = gy + _KY[dy][dx] * patch
        return jnp.abs(gx) + jnp.abs(gy)

    return jnp.mean(jnp.abs(sobel(generate_img) - sobel(image_vis)))


if __name__ == "__main__":
    key = jax.random.PRNGKey(0)
    k1, k2 = jax.random.split(key)
    B, C, H, W = 2, 1, 16, 16
    image_vis = jax.random.uniform(k1, (B, C, H, W), dtype=jnp.float32)
    generate_img = jax.random.uniform(k2, (B, C, H, W), dtype=jnp.float32)

    loss = edge_loss(image_vis, generate_img)
    loss = jax.block_until_ready(loss)

    ref = _edge_loss_ref(image_vis, generate_img)
    assert jnp.allclose(loss, ref, rtol=1e-5, atol=1e-5), (loss, ref)

    print("KERNEL_OK")
</pallas_src>

<mosaic_0001>
module attributes {stable_mosaic.version = 11 : i64} {
  func.func @_edge_loss_kernel(%arg0: i32, %arg1: memref<2x256xf32, #tpu.memory_space<vmem>>, %arg2: memref<2x256xf32, #tpu.memory_space<vmem>>, %arg3: memref<1x1xf32, #tpu.memory_space<smem>>) attributes {dimension_semantics = [#tpu.dimension_semantics<parallel>], iteration_bounds = array<i64: 1>, scalar_prefetch = 0 : i64, scratch_operands = 0 : i64, tpu.core_type = #tpu.core_type<tc>, window_params = [{transform_indices = @transform_0, window_bounds = array<i64: 2, 256>}, {transform_indices = @transform_1, window_bounds = array<i64: 2, 256>}, {transform_indices = @transform_2, window_bounds = array<i64: 1, 1>}]} {
    %0 = tpu.iota {dimensions = array<i32: 1>} : vector<2x256xi32>
    %c16_i32 = arith.constant 16 : i32
    %c0_i32 = arith.constant 0 : i32
    %1 = arith.cmpi eq, %c16_i32, %c0_i32 : i32
    %c1_i32 = arith.constant 1 : i32
    %2 = arith.select %1, %c1_i32, %c16_i32 : i32
    %3 = vector.broadcast %2 : i32 to vector<2x256xi32>
    %4 = arith.remsi %0, %3 : vector<2x256xi32>
    %c0_i32_0 = arith.constant 0 : i32
    %5 = vector.broadcast %c0_i32_0 : i32 to vector<2x256xi32>
    %6 = arith.cmpi ne, %4, %5 : vector<2x256xi32>
    %c0_i32_1 = arith.constant 0 : i32
    %7 = vector.broadcast %c0_i32_1 : i32 to vector<2x256xi32>
    %8 = arith.cmpi slt, %4, %7 : vector<2x256xi32>
    %c0_i32_2 = arith.constant 0 : i32
    %9 = arith.cmpi slt, %2, %c0_i32_2 : i32
    %10 = vector.broadcast %9 : i1 to vector<2x256xi1>
    %11 = vector.broadcast %10 : vector<2x256xi1> to vector<2x256xi1>
    %12 = arith.xori %8, %11 : vector<2x256xi1>
    %13 = arith.andi %12, %6 : vector<2x256xi1>
    %14 = vector.broadcast %2 : i32 to vector<2x256xi32>
    %15 = arith.addi %4, %14 : vector<2x256xi32>
    %16 = arith.select %13, %15, %4 : vector<2x256xi1>, vector<2x256xi32>
    %c0_i32_3 = arith.constant 0 : i32
    %17 = vector.broadcast %c0_i32_3 : i32 to vector<2x256xi32>
    %18 = arith.cmpi ne, %16, %17 : vector<2x256xi32>
    %c15_i32 = arith.constant 15 : i32
    %19 = vector.broadcast %c15_i32 : i32 to vector<2x256xi32>
    %20 = arith.cmpi ne, %16, %19 : vector<2x256xi32>
    %c16_i32_4 = arith.constant 16 : i32
    %21 = vector.broadcast %c16_i32_4 : i32 to vector<2x256xi32>
    %22 = arith.cmpi sge, %0, %21 : vector<2x256xi32>
    %c240_i32 = arith.constant 240 : i32
    %23 = vector.broadcast %c240_i32 : i32 to vector<2x256xi32>
    %24 = arith.cmpi slt, %0, %23 : vector<2x256xi32>
    %c0 = arith.constant 0 : index
    %c0_5 = arith.constant 0 : index
    %25 = vector.load %arg1[%c0, %c0_5] : memref<2x256xf32, #tpu.memory_space<vmem>>, vector<2x256xf32>
    %c1_i32_6 = arith.constant 1 : i32
    %26 = tpu.dynamic_rotate %25 by %c1_i32_6 dim 1 : vector<2x256xf32>, i32 -> vector<2x256xf32>
    %cst = arith.constant 0.000000e+00 : f32
    %27 = vector.broadcast %cst : f32 to vector<2x256xf32>
    %28 = arith.select %18, %26, %27 : vector<2x256xi1>, vector<2x256xf32>
    %c255_i32 = arith.constant 255 : i32
    %29 = tpu.dynamic_rotate %25 by %c255_i32 dim 1 : vector<2x256xf32>, i32 -> vector<2x256xf32>
    %cst_7 = arith.constant 0.000000e+00 : f32
    %30 = vector.broadcast %cst_7 : f32 to vector<2x256xf32>
    %31 = arith.select %20, %29, %30 : vector<2x256xi1>, vector<2x256xf32>
    %32 = arith.subf %31, %28 : vector<2x256xf32>
    %cst_8 = arith.constant 2.000000e+00 : f32
    %33 = vector.broadcast %cst_8 : f32 to vector<2x256xf32>
    %34 = arith.mulf %33, %25 : vector<2x256xf32>
    %35 = arith.addf %28, %34 : vector<2x256xf32>
    %36 = arith.addf %35, %31 : vector<2x256xf32>
    %c16_i32_9 = arith.constant 16 : i32
    %37 = tpu.dynamic_rotate %32 by %c16_i32_9 dim 1 : vector<2x256xf32>, i32 -> vector<2x256xf32>
    %cst_10 = arith.constant 0.000000e+00 : f32
    %38 = vector.broadcast %cst_10 : f32 to vector<2x256xf32>
    %39 = arith.select %22, %37, %38 : vector<2x256xi1>, vector<2x256xf32>
    %c240_i32_11 = arith.constant 240 : i32
    %40 = tpu.dynamic_rotate %32 by %c240_i32_11 dim 1 : vector<2x256xf32>, i32 -> vector<2x256xf32>
    %cst_12 = arith.constant 0.000000e+00 : f32
    %41 = vector.broadcast %cst_12 : f32 to vector<2x256xf32>
    %42 = arith.select %24, %40, %41 : vector<2x256xi1>, vector<2x256xf32>
    %cst_13 = arith.constant 2.000000e+00 : f32
    %43 = vector.broadcast %cst_13 : f32 to vector<2x256xf32>
    %44 = arith.mulf %43, %32 : vector<2x256xf32>
    %45 = arith.addf %39, %44 : vector<2x256xf32>
    %46 = arith.addf %45, %42 : vector<2x256xf32>
    %c16_i32_14 = arith.constant 16 : i32
    %47 = tpu.dynamic_rotate %36 by %c16_i32_14 dim 1 : vector<2x256xf32>, i32 -> vector<2x256xf32>
    %cst_15 = arith.constant 0.000000e+00 : f32
    %48 = vector.broadcast %cst_15 : f32 to vector<2x256xf32>
    %49 = arith.select %22, %47, %48 : vector<2x256xi1>, vector<2x256xf32>
    %c240_i32_16 = arith.constant 240 : i32
    %50 = tpu.dynamic_rotate %36 by %c240_i32_16 dim 1 : vector<2x256xf32>, i32 -> vector<2x256xf32>
    %cst_17 = arith.constant 0.000000e+00 : f32
    %51 = vector.broadcast %cst_17 : f32 to vector<2x256xf32>
    %52 = arith.select %24, %50, %51 : vector<2x256xi1>, vector<2x256xf32>
    %53 = arith.subf %49, %52 : vector<2x256xf32>
    %54 = math.absf %46 : vector<2x256xf32>
    %55 = math.absf %53 : vector<2x256xf32>
    %56 = arith.addf %54, %55 : vector<2x256xf32>
    %c0_18 = arith.constant 0 : index
    %c0_19 = arith.constant 0 : index
    %57 = vector.load %arg2[%c0_18, %c0_19] : memref<2x256xf32, #tpu.memory_space<vmem>>, vector<2x256xf32>
    %c1_i32_20 = arith.constant 1 : i32
    %58 = tpu.dynamic_rotate %57 by %c1_i32_20 dim 1 : vector<2x256xf32>, i32 -> vector<2x256xf32>
    %cst_21 = arith.constant 0.000000e+00 : f32
    %59 = vector.broadcast %cst_21 : f32 to vector<2x256xf32>
    %60 = arith.select %18, %58, %59 : vector<2x256xi1>, vector<2x256xf32>
    %c255_i32_22 = arith.constant 255 : i32
    %61 = tpu.dynamic_rotate %57 by %c255_i32_22 dim 1 : vector<2x256xf32>, i32 -> vector<2x256xf32>
    %cst_23 = arith.constant 0.000000e+00 : f32
    %62 = vector.broadcast %cst_23 : f32 to vector<2x256xf32>
    %63 = arith.select %20, %61, %62 : vector<2x256xi1>, vector<2x256xf32>
    %64 = arith.subf %63, %60 : vector<2x256xf32>
    %cst_24 = arith.constant 2.000000e+00 : f32
    %65 = vector.broadcast %cst_24 : f32 to vector<2x256xf32>
    %66 = arith.mulf %65, %57 : vector<2x256xf32>
    %67 = arith.addf %60, %66 : vector<2x256xf32>
    %68 = arith.addf %67, %63 : vector<2x256xf32>
    %c16_i32_25 = arith.constant 16 : i32
    %69 = tpu.dynamic_rotate %64 by %c16_i32_25 dim 1 : vector<2x256xf32>, i32 -> vector<2x256xf32>
    %cst_26 = arith.constant 0.000000e+00 : f32
    %70 = vector.broadcast %cst_26 : f32 to vector<2x256xf32>
    %71 = arith.select %22, %69, %70 : vector<2x256xi1>, vector<2x256xf32>
    %c240_i32_27 = arith.constant 240 : i32
    %72 = tpu.dynamic_rotate %64 by %c240_i32_27 dim 1 : vector<2x256xf32>, i32 -> vector<2x256xf32>
    %cst_28 = arith.constant 0.000000e+00 : f32
    %73 = vector.broadcast %cst_28 : f32 to vector<2x256xf32>
    %74 = arith.select %24, %72, %73 : vector<2x256xi1>, vector<2x256xf32>
    %cst_29 = arith.constant 2.000000e+00 : f32
    %75 = vector.broadcast %cst_29 : f32 to vector<2x256xf32>
    %76 = arith.mulf %75, %64 : vector<2x256xf32>
    %77 = arith.addf %71, %76 : vector<2x256xf32>
    %78 = arith.addf %77, %74 : vector<2x256xf32>
    %c16_i32_30 = arith.constant 16 : i32
    %79 = tpu.dynamic_rotate %68 by %c16_i32_30 dim 1 : vector<2x256xf32>, i32 -> vector<2x256xf32>
    %cst_31 = arith.constant 0.000000e+00 : f32
    %80 = vector.broadcast %cst_31 : f32 to vector<2x256xf32>
    %81 = arith.select %22, %79, %80 : vector<2x256xi1>, vector<2x256xf32>
    %c240_i32_32 = arith.constant 240 : i32
    %82 = tpu.dynamic_rotate %68 by %c240_i32_32 dim 1 : vector<2x256xf32>, i32 -> vector<2x256xf32>
    %cst_33 = arith.constant 0.000000e+00 : f32
    %83 = vector.broadcast %cst_33 : f32 to vector<2x256xf32>
    %84 = arith.select %24, %82, %83 : vector<2x256xi1>, vector<2x256xf32>
    %85 = arith.subf %81, %84 : vector<2x256xf32>
    %86 = math.absf %78 : vector<2x256xf32>
    %87 = math.absf %85 : vector<2x256xf32>
    %88 = arith.addf %86, %87 : vector<2x256xf32>
    %89 = arith.subf %88, %56 : vector<2x256xf32>
    %90 = math.absf %89 : vector<2x256xf32>
    %91 = vector.shape_cast %90 : vector<2x256xf32> to vector<1x2x256xf32>
    %cst_34 = arith.constant dense<0.000000e+00> : vector<1xf32>
    %92 = vector.multi_reduction <add>, %91, %cst_34 [1, 2] : vector<1x2x256xf32> to vector<1xf32>
    %93 = vector.shape_cast %92 : vector<1xf32> to vector<1x1x1xf32>
    %94 = vector.extract %93[0, 0, 0] : f32 from vector<1x1x1xf32>
    %c0_35 = arith.constant 0 : index
    %c0_36 = arith.constant 0 : index
    %95 = memref.load %arg3[%c0_35, %c0_36] : memref<1x1xf32, #tpu.memory_space<smem>>
    memref.store %94, %arg3[%c0_35, %c0_36] : memref<1x1xf32, #tpu.memory_space<smem>>
    return
  }
  func.func @transform_0(%arg0: i32) -> (i32, i32) {
    %c0_i32 = arith.constant 0 : i32
    %c0_i32_0 = arith.constant 0 : i32
    return %arg0, %c0_i32 : i32, i32
  }
  func.func @transform_1(%arg0: i32) -> (i32, i32) {
    %c0_i32 = arith.constant 0 : i32
    %c0_i32_0 = arith.constant 0 : i32
    return %arg0, %c0_i32 : i32, i32
  }
  func.func @transform_2(%arg0: i32) -> (i32, i32) {
    %c0_i32 = arith.constant 0 : i32
    %c0_i32_0 = arith.constant 0 : i32
    return %arg0, %c0_i32 : i32, i32
  }
}

</mosaic_0001>

<bundles_post_ra>
// kernel: edge_loss.1
= control target key start
LH: loop header
LB: loop body
LE: loop exit
PB: predicated region body
PF: predicated region fallthrough
CT: control target
= control target key end

     0   :  { %v12_v0 = vlaneseq  ;;  %v287_v1 = vmov 1983009808   ;;  %s450_s0 = inlined_call_operand.vmem [shape: f32[2,256], index: 0, kind: input, shape index: {}]   ;;  %s451_s1 = inlined_call_operand.vmem [shape: f32[2,256], index: 1, kind: input, shape index: {}]   ;;  %s452_s2 = inlined_call_operand.hbm [shape: f32[1,1], index: 2, kind: output, shape index: {}]  }
   0x1   :  { %v50_v2 = vunpack.c.l.s4 %v287_v1 }
   0x2   :  { %7 = vsyncpa [#allocation3], 0  ;;  %v47_v3 = vld [vmem:[%s450_s0] sm:$0xf]  ;;  %v53_v4 = vshrl.u32 %v12_v0, 7  ;;  %s288_s13 = smov 127  }
   0x3   :  { %v143_v5 = vld [vmem:[%s451_s1] sm:$0xf]  ;;  %v51_v6 = vunpack.c.0.s8 %v50_v2  ;;  %v79_v7 = vmul.f32 2.0, %v47_v3  ;;  %s289_s14 = smov 1   ;;  %v318_v16 = vand.u32 127, %v12_v0  ;;  %s290_s0 = smov 16  }
   0x4   :  { %v173_v8 = vmul.f32 2.0, %v143_v5  ;;  %s291_s1 = smov 112   ;;  %vm239_vm10 = vcmask 1041408   ;;  %s275_s18 = scalar_lea.hbm %s452_s2, 16 }
   0x5   :  { %v54_v9 = vsub.s32 %v51_v6, %v53_v4  ;;  %v321_v17 = vadd.s32 128, %v318_v16  ;;  %v19_v20 = vand.u32 15, %v318_v16  ;;  %vm72_vm0 = vcmp.lt.s32.totalorder %v318_v16, 127  ;;  %p276_p0 = scmp.ne.s32.totalorder %s452_s2, %s275_s18  ;;  %p279_p1 = scmp.lt.u32.totalorder %s275_s18, %s452_s2 }
   0x6   :  { %vm63_vm3 = vcmp.lt.s32.totalorder %v318_v16, 1  ;;  %vm99_vm6 = vcmp.lt.s32.totalorder %v318_v16, 16  ;;  %vm43_vm7 = vcmp.ge.s32.totalorder %v318_v16, 16  ;;  %vm108_vm8 = vcmp.lt.s32.totalorder %v318_v16, 112 }
   0x7   :  { %v55_v10 = vrot.slane %v47_v3, %v54_v9  ;;  %v314_v11 = vrot.slane %v173_v8, %v54_v9  ;;  %v316_v12 = vrot.slane %v79_v7, %v54_v9  ;;  %v151_v13 = vrot.slane %v143_v5, %v54_v9  ;;  %p281_p2 = pnand %p279_p1, %p276_p0 }
   0x8   :  { %v26_v21 = vand.u32 15, %v321_v17  ;;  %vm326_vm1 = vcmp.ne.s32.totalorder %v19_v20, 15  ;;  %vm330_vm2 = vcmp.ne.s32.totalorder %v19_v20, 0  ;;  %vm46_vm9 = vcmp.lt.s32.totalorder %v321_v17, 240 }
   0x9   :  { %68 = vrot.lane.b32.xlu1 %v55_v10, %s288_s13  ;;  %59 = vrot.lane.b32.xlu0 %v55_v10, %s289_s14  ;;  %v56_v14 = vcombine.high %v55_v10, %v55_v10  ;;  %v152_v15 = vcombine.high %v151_v13, %v151_v13  ;;  %v88_v52 = vcombine.high %v316_v12, %v316_v12 }
   0xa   :  { %vm335_vm4 = vcmp.ne.s32.totalorder %v26_v21, 15  ;;  %vm343_vm5 = vcmp.ne.s32.totalorder %v26_v21, 0  ;;  %v182_v57 = vcombine.high %v314_v11, %v314_v11 }
   0xd   :  { %155 = vrot.lane.b32.xlu0 %v151_v13, %s289_s14  ;;  %70 = vrot.lane.b32.xlu1 %v56_v14, %s288_s13 }
  0x11   :  { %157 = vrot.lane.b32.xlu1 %v152_v15, %s289_s14  ;;  %61 = vrot.lane.b32.xlu0 %v56_v14, %s289_s14 }
  0x15   :  { %165 = vrot.lane.b32.xlu1 %v152_v15, %s288_s13  ;;  %163 = vrot.lane.b32.xlu0 %v151_v13, %s288_s13 }
  0x7b   :  { %v69_v18 = vpop.permute.xlu1 %68  ;;  %v60_v19 = vpop.permute.xlu0 %59 }
  0x7f   :  { %v156_v22 = vpop.permute.xlu0 %155  ;;  %v71_v23 = vpop.permute.xlu1 %70 }
  0x80   :  { %v73_v27 = vsel %vm72_vm0, %v69_v18, %v71_v23  ;;  %v74_v28 = vsel %vm72_vm0, %v71_v23, %v69_v18 }
  0x81   :  { %v75_v34 = vsel %vm326_vm1, %v73_v27, 0.0  ;;  %v76_v35 = vsel %vm335_vm4, %v74_v28, 0.0 }
  0x83   :  { %v158_v30 = vpop.permute.xlu1 %157  ;;  %v62_v31 = vpop.permute.xlu0 %61 }
  0x84   :  { %v64_v32 = vsel %vm63_vm3, %v60_v19, %v62_v31  ;;  %v65_v33 = vsel %vm63_vm3, %v62_v31, %v60_v19  ;;  %v159_v38 = vsel %vm63_vm3, %v156_v22, %v158_v30  ;;  %v160_v39 = vsel %vm63_vm3, %v158_v30, %v156_v22 }
  0x85   :  { %v66_v36 = vsel %vm330_vm2, %v65_v33, 0.0  ;;  %v67_v37 = vsel %vm343_vm5, %v64_v32, 0.0  ;;  %v161_v46 = vsel %vm330_vm2, %v160_v39, 0.0  ;;  %v162_v47 = vsel %vm343_vm5, %v159_v38, 0.0 }
  0x86   :  { %v355_v40 = vsub.f32 %v75_v34, %v66_v36  ;;  %v78_v41 = vsub.f32 %v76_v35, %v67_v37  ;;  %v91_v53 = vadd.f32 %v316_v12, %v66_v36  ;;  %v92_v54 = vadd.f32 %v88_v52, %v67_v37 }
  0x87   :  { %v166_v42 = vpop.permute.xlu1 %165  ;;  %v164_v43 = vpop.permute.xlu0 %163  ;;  %v185_v58 = vadd.f32 %v314_v11, %v161_v46  ;;  %v186_v59 = vadd.f32 %v182_v57, %v162_v47 }
  0x88   :  { %v167_v44 = vsel %vm72_vm0, %v164_v43, %v166_v42  ;;  %v168_v45 = vsel %vm72_vm0, %v166_v42, %v164_v43  ;;  %95 = vrot.lane.b32.xlu0 %v355_v40, %s290_s0  ;;  %97 = vrot.lane.b32.xlu1 %v78_v41, %s290_s0  ;;  %v93_v55 = vadd.f32 %v91_v53, %v75_v34  ;;  %v114_v14 = vmul.f32 2.0, %v78_v41 }
  0x89   :  { %v169_v48 = vsel %vm326_vm1, %v167_v44, 0.0  ;;  %v170_v49 = vsel %vm335_vm4, %v168_v45, 0.0  ;;  %v94_v56 = vadd.f32 %v92_v54, %v76_v35  ;;  %v113_v19 = vmul.f32 2.0, %v355_v40 }
  0x8a   :  { %v171_v50 = vsub.f32 %v169_v48, %v161_v46  ;;  %v172_v51 = vsub.f32 %v170_v49, %v162_v47  ;;  %v187_v60 = vadd.f32 %v185_v58, %v169_v48  ;;  %v188_v61 = vadd.f32 %v186_v59, %v170_v49 }
  0x8c   :  { %189 = vrot.lane.b32.xlu0 %v171_v50, %s290_s0  ;;  %191 = vrot.lane.b32.xlu1 %v172_v51, %s290_s0  ;;  %v205_v20 = vmul.f32 2.0, %v171_v50  ;;  %v206_v24 = vmul.f32 2.0, %v172_v51 }
  0x90   :  { %104 = vrot.lane.b32.xlu0 %v355_v40, %s291_s1  ;;  %106 = vrot.lane.b32.xlu1 %v78_v41, %s291_s1 }
  0x94   :  { %197 = vrot.lane.b32.xlu0 %v171_v50, %s291_s1  ;;  %199 = vrot.lane.b32.xlu1 %v172_v51, %s291_s1 }
  0x98   :  { %119 = vrot.lane.b32.xlu0 %v93_v55, %s290_s0  ;;  %121 = vrot.lane.b32.xlu1 %v94_v56, %s290_s0 }
  0x9c   :  { %127 = vrot.lane.b32.xlu0 %v93_v55, %s291_s1  ;;  %129 = vrot.lane.b32.xlu1 %v94_v56, %s291_s1 }
  0xa0   :  { %211 = vrot.lane.b32.xlu0 %v187_v60, %s290_s0  ;;  %213 = vrot.lane.b32.xlu1 %v188_v61, %s290_s0 }
  0xa4   :  { %219 = vrot.lane.b32.xlu0 %v187_v60, %s291_s1  ;;  %221 = vrot.lane.b32.xlu1 %v188_v61, %s291_s1 }
  0xfa   :  { %v96_v62 = vpop.permute.xlu0 %95  ;;  %v98_v63 = vpop.permute.xlu1 %97 }
  0xfb   :  { %v101_v8 = vsel %vm99_vm6, %v98_v63, %v96_v62  ;;  %v100_v10 = vsel %vm99_vm6, %v96_v62, %v98_v63 }
  0xfc   :  { %v102_v13 = vsel %vm43_vm7, %v101_v8, 0.0  ;;  %v116_v23 = vadd.f32 %v114_v14, %v100_v10 }
  0xfd   :  { %v115_v27 = vadd.f32 %v113_v19, %v102_v13 }
  0xfe   :  { %v190_v0 = vpop.permute.xlu0 %189  ;;  %v192_v1 = vpop.permute.xlu1 %191 }
  0xff   :  { %v194_v9 = vsel %vm99_vm6, %v192_v1, %v190_v0  ;;  %v193_v28 = vsel %vm99_vm6, %v190_v0, %v192_v1 }
 0x100   :  { %v195_v15 = vsel %vm43_vm7, %v194_v9, 0.0  ;;  %v208_v41 = vadd.f32 %v206_v24, %v193_v28 }
 0x101   :  { %v207_v29 = vadd.f32 %v205_v20, %v195_v15 }
 0x102   :  { %v105_v2 = vpop.permute.xlu0 %104  ;;  %v107_v3 = vpop.permute.xlu1 %106 }
 0x103   :  { %v110_v21 = vsel %vm108_vm8, %v107_v3, %v105_v2  ;;  %v109_v33 = vsel %vm108_vm8, %v105_v2, %v107_v3 }
 0x104   :  { %v112_v34 = vsel %vm46_vm9, %v110_v21, 0.0  ;;  %v117_v43 = vadd.f32 %v115_v27, %v109_v33 }
 0x105   :  { %v118_v44 = vadd.f32 %v116_v23, %v112_v34 }
 0x106   :  { %v198_v4 = vpop.permute.xlu0 %197  ;;  %v200_v5 = vpop.permute.xlu1 %199  ;;  %v137_v58 = vand.u32 2147483647, %v117_v43 }
 0x107   :  { %v202_v25 = vsel %vm108_vm8, %v200_v5, %v198_v4  ;;  %v201_v35 = vsel %vm108_vm8, %v198_v4, %v200_v5  ;;  %v138_v61 = vand.u32 2147483647, %v118_v44 }
 0x108   :  { %v204_v37 = vsel %vm46_vm9, %v202_v25, 0.0  ;;  %v209_v45 = vadd.f32 %v207_v29, %v201_v35 }
 0x109   :  { %v210_v48 = vadd.f32 %v208_v41, %v204_v37 }
 0x10a   :  { %v120_v6 = vpop.permute.xlu0 %119  ;;  %v122_v7 = vpop.permute.xlu1 %121  ;;  %v229_v59 = vand.u32 2147483647, %v209_v45 }
 0x10b   :  { %v124_v22 = vsel %vm99_vm6, %v122_v7, %v120_v6  ;;  %v123_v38 = vsel %vm99_vm6, %v120_v6, %v122_v7  ;;  %v230_v62 = vand.u32 2147483647, %v210_v48 }
 0x10c   :  { %v125_v36 = vsel %vm43_vm7, %v124_v22, 0.0 }
 0x10e   :  { %v128_v11 = vpop.permute.xlu0 %127  ;;  %v130_v12 = vpop.permute.xlu1 %129 }
 0x10f   :  { %v132_v18 = vsel %vm108_vm8, %v130_v12, %v128_v11  ;;  %v131_v26 = vsel %vm108_vm8, %v128_v11, %v130_v12 }
 0x110   :  { %v134_v30 = vsel %vm46_vm9, %v132_v18, 0.0  ;;  %v135_v39 = vsub.f32 %v125_v36, %v131_v26 }
 0x111   :  { %v136_v42 = vsub.f32 %v123_v38, %v134_v30 }
 0x112   :  { %v212_v31 = vpop.permute.xlu0 %211  ;;  %v214_v32 = vpop.permute.xlu1 %213  ;;  %v139_v52 = vand.u32 2147483647, %v135_v39 }
 0x113   :  { %v216_v40 = vsel %vm99_vm6, %v214_v32, %v212_v31  ;;  %v215_v53 = vsel %vm99_vm6, %v212_v31, %v214_v32  ;;  %v140_v56 = vand.u32 2147483647, %v136_v42 }
 0x114   :  { %v217_v49 = vsel %vm43_vm7, %v216_v40, 0.0  ;;  %v141_v0 = vadd.f32 %v139_v52, %v137_v58 }
 0x115   :  { %v142_v2 = vadd.f32 %v140_v56, %v138_v61 }
 0x116   :  { %v220_v46 = vpop.permute.xlu0 %219  ;;  %v222_v47 = vpop.permute.xlu1 %221 }
 0x117   :  { %v223_v50 = vsel %vm108_vm8, %v220_v46, %v222_v47  ;;  %v224_v51 = vsel %vm108_vm8, %v222_v47, %v220_v46 }
 0x118   :  { %v226_v54 = vsel %vm46_vm9, %v224_v51, 0.0  ;;  %v227_v55 = vsub.f32 %v217_v49, %v223_v50 }
 0x119   :  { %v228_v57 = vsub.f32 %v215_v53, %v226_v54 }
 0x11a   :  { %v231_v60 = vand.u32 2147483647, %v227_v55 }
 0x11b   :  { %v232_v63 = vand.u32 2147483647, %v228_v57 }
 0x11c   :  { %v233_v1 = vadd.f32 %v231_v60, %v229_v59 }
 0x11d   :  { %v234_v3 = vadd.f32 %v232_v63, %v230_v62 }
 0x11e   :  { %v235_v4 = vsub.f32 %v233_v1, %v141_v0 }
 0x11f   :  { %v236_v5 = vsub.f32 %v234_v3, %v142_v2 }
 0x120   :  { %v237_v16 = vand.u32 2147483647, %v235_v4 }
 0x121   :  { %v238_v6 = vand.u32 2147483647, %v236_v5 }
 0x122   :  { %v240_v17 = vsel %vm239_vm10, %v237_v16, 0.0 }
 0x123   :  { %v241_v7 = vsel %vm239_vm10, %v238_v6, 0.0 }
 0x124   :  { %v242_v8 = vadd.f32 %v241_v7, %v240_v17 }
 0x126   :  { %243 = vadd.xlane.f32.xlu0 %v242_v8 }
 0x1b3   :  { %v244_v9 = vpop.xlane.xlu0 %243 }
 0x1b4   :  { %v245_v10 = vrot.slane %v244_v9, 4 }
 0x1b6   :  { %v246_v11 = vadd.f32 %v245_v10, %v244_v9 }
 0x1b8   :  { %v247_v12 = vrot.slane %v246_v11, 2 }
 0x1ba   :  { %v248_v13 = vadd.f32 %v247_v12, %v246_v11 }
 0x1bc   :  { %v249_v14 = vrot.slane %v248_v13, 1 }
 0x1be   :  { %v250_v15 = vadd.f32 %v249_v14, %v248_v13 }
 0x1c0   :  { %267 = vpush %v250_v15 }
 0x1f1   :  { %s268_s15 = spop %267 }
 0x1f2   :  { %253 = sst [smem:[#allocation2]] %s268_s15 }
 0x1f3   :  { %284 = shalt.err (!%p281_p2)
}
 0x1f4   :  { %s292_s23 = smov [#allocation2]  }
 0x1f5   :  { %261 = dma.smem_to_hbm %s292_s23, 16, %s452_s2, [#allocation3]  }
 0x1f6   :  { %285 = dma.done.wait [#allocation3], 16  }
 0x1f7   :  { %286 = vsyncadd [#allocation3], 4294967280 }
 0x1f8   :  { %265 = sfence }
 0x1f9   :  { %266 = vsyncpa [#allocation3], 1 }

</bundles_post_ra>
